<compile_context>
chip_gen: v5e
topology: v5e:2x2
jax: 0.10.0
libtpu: 0.0.40
codegen_flags: <defaults>
</compile_context>

<pallas_src>
import functools

import jax
import jax.numpy as jnp
from jax.experimental import pallas as pl
from jax.experimental.pallas import tpu as pltpu

LANE = 128  # TPU lane width


# ----------------------------- kernel math -----------------------------------
def _qfocal_elementwise(x, t, alpha, gamma):
    """Element-wise quality focal loss in f32. x = logits, t = targets."""
    # Numerically stable BCE-with-logits (reduction='none'):
    #   max(x, 0) - x*t + log1p(exp(-|x|))
    bce = jnp.maximum(x, 0.0) - x * t + jnp.log1p(jnp.exp(-jnp.abs(x)))
    pred_prob = jax.nn.sigmoid(x)
    alpha_factor = t * alpha + (1.0 - t) * (1.0 - alpha)
    d = jnp.abs(t - pred_prob)
    if gamma == 1.5:                       # default: avoid pow() exp/log pair
        modulating = d * jnp.sqrt(d)
    elif gamma == 2.0:
        modulating = d * d
    elif gamma == 1.0:
        modulating = d
    else:
        modulating = d ** gamma
    return bce * alpha_factor * modulating


# ----------------------------- Pallas kernels ---------------------------------
def _qfocal_reduce_kernel(pred_ref, true_ref, out_ref, *,
                          alpha, gamma, total, tile_rows, masked, mean):
    """Fused element-wise focal loss + running sum (mean/sum reductions).

    pred_ref/true_ref: (tile_rows, 128) lane-dense blocks.
    out_ref:           (1, 1) f32 accumulator, resident across the grid.
    """
    i = pl.program_id(0)

    @pl.when(i == 0)
    def _():
        out_ref[...] = jnp.zeros_like(out_ref)

    x = pred_ref[...].astype(jnp.float32)
    t = true_ref[...].astype(jnp.float32)
    loss = _qfocal_elementwise(x, t, alpha, gamma)

    if masked:  # static: only emitted when the flattened input was padded
        rows, lanes = loss.shape
        row_idx = jax.lax.broadcasted_iota(jnp.int32, (rows, lanes), 0)
        lane_idx = jax.lax.broadcasted_iota(jnp.int32, (rows, lanes), 1)
        flat_idx = (i * tile_rows + row_idx) * lanes + lane_idx
        loss = jnp.where(flat_idx < total, loss, 0.0)

    out_ref[...] += jnp.sum(loss)

    if mean:
        @pl.when(i == pl.num_programs(0) - 1)
        def _():
            out_ref[...] = out_ref[...] * (1.0 / total)


def _qfocal_none_kernel(pred_ref, true_ref, out_ref, *, alpha, gamma):
    """Element-wise focal loss, lane-dense in/out (reduction='none')."""
    x = pred_ref[...].astype(jnp.float32)
    t = true_ref[...].astype(jnp.float32)
    out_ref[...] = _qfocal_elementwise(x, t, alpha, gamma).astype(out_ref.dtype)


# ------------------------------- wrapper --------------------------------------
@functools.partial(jax.jit,
                   static_argnames=("gamma", "alpha", "reduction", "tile_rows"))
def qfocal_loss(pred, true, gamma=1.5, alpha=0.25, reduction="mean",
                tile_rows=512):
    """QFocalLoss(nn.BCEWithLogitsLoss()) forward. pred/true: same shape."""
    assert pred.shape == true.shape, (pred.shape, true.shape)
    orig_shape = pred.shape
    total = pred.size

    # Flatten to a lane-dense (rows, 128) layout; pad rows to a tile multiple.
    rows = -(-total // LANE)
    tm = min(int(tile_rows), ((rows + 7) // 8) * 8)
    tm = max(8, ((tm + 7) // 8) * 8)
    rows_pad = ((rows + tm - 1) // tm) * tm
    pad = rows_pad * LANE - total

    def to_slab(a):
        flat = a.reshape(-1)
        if pad:
            flat = jnp.pad(flat, (0, pad))
        return flat.reshape(rows_pad, LANE)

    pred2d = to_slab(pred)
    true2d = to_slab(true)
    num_tiles = rows_pad // tm

    if reduction in ("mean", "sum"):
        kernel = functools.partial(
            _qfocal_reduce_kernel, alpha=float(alpha), gamma=float(gamma),
            total=int(total), tile_rows=int(tm), masked=bool(pad),
            mean=(reduction == "mean"))
        out = pl.pallas_call(
            kernel,
            out_shape=jax.ShapeDtypeStruct((1, 1), jnp.float32),
            grid_spec=pltpu.PrefetchScalarGridSpec(
                num_scalar_prefetch=0,
                grid=(num_tiles,),
                in_specs=[
                    pl.BlockSpec((tm, LANE), lambda i: (i, 0)),
                    pl.BlockSpec((tm, LANE), lambda i: (i, 0)),
                ],
                out_specs=pl.BlockSpec((1, 1), lambda i: (0, 0)),
            ),
            compiler_params=pltpu.CompilerParams(
                dimension_semantics=("arbitrary",)),
        )(pred2d, true2d)
        return out[0, 0]

    # reduction == 'none'
    kernel = functools.partial(_qfocal_none_kernel,
                               alpha=float(alpha), gamma=float(gamma))
    out2d = pl.pallas_call(
        kernel,
        out_shape=jax.ShapeDtypeStruct((rows_pad, LANE), jnp.float32),
        grid_spec=pltpu.PrefetchScalarGridSpec(
            num_scalar_prefetch=0,
            grid=(num_tiles,),
            in_specs=[
                pl.BlockSpec((tm, LANE), lambda i: (i, 0)),
                pl.BlockSpec((tm, LANE), lambda i: (i, 0)),
            ],
            out_specs=pl.BlockSpec((tm, LANE), lambda i: (i, 0)),
        ),
        compiler_params=pltpu.CompilerParams(
            dimension_semantics=("parallel",)),
    )(pred2d, true2d)
    return out2d.reshape(-1)[:total].reshape(orig_shape)


class QFocalLoss:
    """Mirror of the PyTorch module (loss_fcn = default BCEWithLogitsLoss)."""

    def __init__(self, gamma=1.5, alpha=0.25, reduction="mean"):
        self.gamma = gamma
        self.alpha = alpha
        self.reduction = reduction  # taken from loss_fcn (default 'mean')

    def __call__(self, pred, true):
        return qfocal_loss(pred, true, gamma=self.gamma, alpha=self.alpha,
                           reduction=self.reduction)


# ----------------------------- reference check --------------------------------
def _reference_elementwise(pred, true, gamma=1.5, alpha=0.25):
    x = pred.astype(jnp.float32)
    t = true.astype(jnp.float32)
    bce = jnp.maximum(x, 0.0) - x * t + jnp.log1p(jnp.exp(-jnp.abs(x)))
    p = jax.nn.sigmoid(x)
    return bce * (t * alpha + (1.0 - t) * (1.0 - alpha)) * jnp.abs(t - p) ** gamma


if __name__ == "__main__":
    key = jax.random.PRNGKey(0)
    k1, k2 = jax.random.split(key)
    shape = (2, 4, 16, 16)
    pred = jax.random.normal(k1, shape, jnp.float32)                  # logits
    true = (jax.random.uniform(k2, shape) > 0.5).astype(jnp.float32)  # targets

    out_mean = QFocalLoss(reduction="mean")(pred, true)
    out_sum = QFocalLoss(reduction="sum")(pred, true)
    out_none = QFocalLoss(reduction="none")(pred, true)
    jax.block_until_ready((out_mean, out_sum, out_none))

    ref = _reference_elementwise(pred, true)
    assert out_mean.shape == (), out_mean.shape
    assert out_none.shape == shape, out_none.shape
    assert jnp.allclose(out_mean, ref.mean(), atol=1e-5, rtol=1e-4), (
        float(out_mean), float(ref.mean()))
    assert jnp.allclose(out_sum, ref.sum(), atol=1e-3, rtol=1e-4), (
        float(out_sum), float(ref.sum()))
    assert jnp.allclose(out_none, ref, atol=1e-5, rtol=1e-4), float(
        jnp.max(jnp.abs(out_none - ref)))

    print("KERNEL_OK")
</pallas_src>

<mosaic_0001>
module attributes {stable_mosaic.version = 11 : i64} {
  func.func @_qfocal_reduce_kernel(%arg0: i32, %arg1: memref<16x128xf32, #tpu.memory_space<vmem>>, %arg2: memref<16x128xf32, #tpu.memory_space<vmem>>, %arg3: memref<1x1xf32, #tpu.memory_space<vmem>>) attributes {dimension_semantics = [#tpu.dimension_semantics<arbitrary>], iteration_bounds = array<i64: 1>, scalar_prefetch = 0 : i64, scratch_operands = 0 : i64, tpu.core_type = #tpu.core_type<tc>, window_params = [{transform_indices = @transform_0, window_bounds = array<i64: 16, 128>}, {transform_indices = @transform_1, window_bounds = array<i64: 16, 128>}, {pipeline_mode = #tpu.pipeline_mode<synchronous>, transform_indices = @transform_2, window_bounds = array<i64: 1, 1>}]} {
    %c0_i32 = arith.constant 0 : i32
    %0 = arith.cmpi eq, %arg0, %c0_i32 : i32
    %1 = arith.extui %0 : i1 to i32
    %c0_i32_0 = arith.constant 0 : i32
    %2 = arith.cmpi ne, %1, %c0_i32_0 : i32
    scf.if %2 {
      %cst_16 = arith.constant 0.000000e+00 : f32
      %44 = vector.broadcast %cst_16 : f32 to vector<1x1xf32>
      %c0_17 = arith.constant 0 : index
      %c0_18 = arith.constant 0 : index
      %45 = vector.load %arg3[%c0_17, %c0_18] : memref<1x1xf32, #tpu.memory_space<vmem>>, vector<1x1xf32>
      tpu.vector_store %arg3[%c0_17, %c0_18], %44 {strides = array<i32>} : memref<1x1xf32, #tpu.memory_space<vmem>>, vector<1x1xf32>,
    } else {
    }
    %c0 = arith.constant 0 : index
    %c0_1 = arith.constant 0 : index
    %3 = vector.load %arg1[%c0, %c0_1] : memref<16x128xf32, #tpu.memory_space<vmem>>, vector<16x128xf32>
    %c0_2 = arith.constant 0 : index
    %c0_3 = arith.constant 0 : index
    %4 = vector.load %arg2[%c0_2, %c0_3] : memref<16x128xf32, #tpu.memory_space<vmem>>, vector<16x128xf32>
    %cst = arith.constant 0.000000e+00 : f32
    %5 = vector.broadcast %cst : f32 to vector<16x128xf32>
    %6 = arith.maximumf %3, %5 : vector<16x128xf32>
    %7 = arith.mulf %3, %4 : vector<16x128xf32>
    %8 = arith.subf %6, %7 : vector<16x128xf32>
    %9 = math.absf %3 : vector<16x128xf32>
    %cst_4 = arith.constant 0.000000e+00 : f32
    %10 = vector.broadcast %cst_4 : f32 to vector<16x128xf32>
    %11 = arith.subf %10, %9 : vector<16x128xf32>
    %12 = math.exp %11 : vector<16x128xf32>
    %13 = math.log1p %12 : vector<16x128xf32>
    %14 = arith.addf %8, %13 : vector<16x128xf32>
    %15 = arith.negf %3 : vector<16x128xf32>
    %16 = math.exp %15 : vector<16x128xf32>
    %cst_5 = arith.constant 1.000000e+00 : f32
    %17 = vector.broadcast %cst_5 : f32 to vector<16x128xf32>
    %18 = arith.addf %17, %16 : vector<16x128xf32>
    %19 = arith.divf %17, %18 : vector<16x128xf32>
    %cst_6 = arith.constant 2.500000e-01 : f32
    %20 = vector.broadcast %cst_6 : f32 to vector<16x128xf32>
    %21 = arith.mulf %4, %20 : vector<16x128xf32>
    %cst_7 = arith.constant 1.000000e+00 : f32
    %22 = vector.broadcast %cst_7 : f32 to vector<16x128xf32>
    %23 = arith.subf %22, %4 : vector<16x128xf32>
    %cst_8 = arith.constant 7.500000e-01 : f32
    %24 = vector.broadcast %cst_8 : f32 to vector<16x128xf32>
    %25 = arith.mulf %23, %24 : vector<16x128xf32>
    %26 = arith.addf %21, %25 : vector<16x128xf32>
    %27 = arith.subf %4, %19 : vector<16x128xf32>
    %28 = math.absf %27 : vector<16x128xf32>
    %29 = math.sqrt %28 : vector<16x128xf32>
    %30 = arith.mulf %28, %29 : vector<16x128xf32>
    %31 = arith.mulf %14, %26 : vector<16x128xf32>
    %32 = arith.mulf %31, %30 : vector<16x128xf32>
    %c0_9 = arith.constant 0 : index
    %c0_10 = arith.constant 0 : index
    %33 = vector.load %arg3[%c0_9, %c0_10] : memref<1x1xf32, #tpu.memory_space<vmem>>, vector<1x1xf32>
    %34 = vector.shape_cast %32 : vector<16x128xf32> to vector<1x16x128xf32>
    %cst_11 = arith.constant dense<0.000000e+00> : vector<1xf32>
    %35 = vector.multi_reduction <add>, %34, %cst_11 [1, 2] : vector<1x16x128xf32> to vector<1xf32>
    %36 = vector.shape_cast %35 : vector<1xf32> to vector<1x1x1xf32>
    %37 = vector.extract %36[0, 0, 0] : f32 from vector<1x1x1xf32>
    %38 = vector.broadcast %37 : f32 to vector<1x1xf32>
    %39 = arith.addf %33, %38 : vector<1x1xf32>
    %c0_12 = arith.constant 0 : index
    %c0_13 = arith.constant 0 : index
    %40 = vector.load %arg3[%c0_12, %c0_13] : memref<1x1xf32, #tpu.memory_space<vmem>>, vector<1x1xf32>
    tpu.vector_store %arg3[%c0_12, %c0_13], %39 {strides = array<i32>} : memref<1x1xf32, #tpu.memory_space<vmem>>, vector<1x1xf32>,
    %c0_i32_14 = arith.constant 0 : i32
    %41 = arith.cmpi eq, %arg0, %c0_i32_14 : i32
    %42 = arith.extui %41 : i1 to i32
    %c0_i32_15 = arith.constant 0 : i32
    %43 = arith.cmpi ne, %42, %c0_i32_15 : i32
    scf.if %43 {
      %c0_16 = arith.constant 0 : index
      %c0_17 = arith.constant 0 : index
      %44 = vector.load %arg3[%c0_16, %c0_17] : memref<1x1xf32, #tpu.memory_space<vmem>>, vector<1x1xf32>
      %cst_18 = arith.constant 4.8828125E-4 : f32
      %45 = vector.broadcast %cst_18 : f32 to vector<1x1xf32>
      %46 = arith.mulf %44, %45 : vector<1x1xf32>
      %c0_19 = arith.constant 0 : index
      %c0_20 = arith.constant 0 : index
      %47 = vector.load %arg3[%c0_19, %c0_20] : memref<1x1xf32, #tpu.memory_space<vmem>>, vector<1x1xf32>
      tpu.vector_store %arg3[%c0_19, %c0_20], %46 {strides = array<i32>} : memref<1x1xf32, #tpu.memory_space<vmem>>, vector<1x1xf32>,
    } else {
    }
    return
  }
  func.func @transform_0(%arg0: i32) -> (i32, i32) {
    %c0_i32 = arith.constant 0 : i32
    %c0_i32_0 = arith.constant 0 : i32
    return %arg0, %c0_i32 : i32, i32
  }
  func.func @transform_1(%arg0: i32) -> (i32, i32) {
    %c0_i32 = arith.constant 0 : i32
    %c0_i32_0 = arith.constant 0 : i32
    return %arg0, %c0_i32 : i32, i32
  }
  func.func @transform_2(%arg0: i32) -> (i32, i32) {
    %c0_i32 = arith.constant 0 : i32
    %c0_i32_0 = arith.constant 0 : i32
    %c0_i32_1 = arith.constant 0 : i32
    return %c0_i32, %c0_i32_0 : i32, i32
  }
}

</mosaic_0001>

<bundles_post_ra>
// kernel: qfocal_loss.1
= control target key start
LH: loop header
LB: loop body
LE: loop exit
PB: predicated region body
PF: predicated region fallthrough
CT: control target
= control target key end

     0   :  { %s300_s0 = inlined_call_operand.vmem [shape: f32[16,128], index: 0, kind: input, shape index: {}]   ;;  %s301_s1 = inlined_call_operand.vmem [shape: f32[16,128], index: 1, kind: input, shape index: {}]   ;;  %s302_s2 = inlined_call_operand.hbm [shape: f32[1,1], index: 2, kind: output, shape index: {}]  }
   0x1   :  { %v245_v0 = vld [vmem:[%s300_s0] sm:$0xff]  ;;  %v250_v1 = vld [vmem:[%s300_s0 + $0x8] sm:$0xff] }
   0x2   :  { %v173_v2 = vmul.f32 -1.442695, %v245_v0  ;;  %v174_v3 = vmul.f32 -1.442695, %v250_v1 }
   0x3   :  { %7 = vsyncpa [#allocation3], 0  ;;  %v28_v4 = vand.u32 2147483647, %v245_v0  ;;  %v29_v5 = vand.u32 2147483647, %v250_v1 }
   0x4   :  { %179 = vpow2.f32 %v173_v2  ;;  %v20_v32 = vld [vmem:[%s301_s1] sm:$0xff]  ;;  %v21_v34 = vld [vmem:[%s301_s1 + $0x8] sm:$0xff]  ;;  %v22_v53 = vmax.f32 %v245_v0, 0.0  ;;  %v23_v57 = vmax.f32 %v250_v1, 0.0  ;;  %vm16_vm14 = vcmask 0   ;;  %s226_s16 = smov [#allocation2]  }
   0x5   :  { %181 = vpow2.f32 %v174_v3  ;;  %v30_v8 = vsub.f32 0.0, %v28_v4  ;;  %v31_v10 = vsub.f32 0.0, %v29_v5  ;;  %v24_v54 = vmul.f32 %v20_v32, %v245_v0  ;;  %s162_s17 = sshll.u32 %s226_s16, 4  ;;  %s164_s20 = sshll.u32 %s302_s2, 4  ;;  %s163_s17 = int_to_ptr.vmem [resolvable:$true] %s162_s17  ;;  %s165_s20 = int_to_ptr.hbm [resolvable:$true] %s164_s20 }
   0x6   :  { %v96_v58 = vsub.f32 1.0, %v20_v32  ;;  %v97_v59 = vsub.f32 1.0, %v21_v34  ;;  %v25_v61 = vmul.f32 %v21_v34, %v250_v1 }
   0x7   :  { %v32_v12 = vmul.f32 1.442695, %v30_v8  ;;  %v34_v13 = vmul.f32 1.442695, %v31_v10  ;;  %v94_v8 = vmul.f32 0.25, %v20_v32  ;;  %v95_v10 = vmul.f32 0.25, %v21_v34 }
   0x8   :  { %v99_v1 = vmul.f32 0.75, %v97_v59 }
   0xa   :  { %v180_v6 = vpop.eup %179 }
   0xb   :  { %v182_v7 = vpop.eup %181  ;;  %v62_v9 = vadd.f32 1.0, %v180_v6  ;;  %v26_v6 = vsub.f32 %v22_v53, %v24_v54 }
   0xc   :  { %v63_v11 = vadd.f32 1.0, %v182_v7 }
   0xd   :  { %183 = vrcp.f32 %v62_v9  ;;  %vm69_vm0 = vweird.f32 %v62_v9  ;;  %v75_v17 = vand.u32 2147483648, %v62_v9  ;;  %v73_v20 = vand.u32 2147483647, %v62_v9 }
   0xe   :  { %185 = vrcp.f32 %v63_v11  ;;  %v90_v21 = vand.u32 2147483648, %v63_v11  ;;  %vm84_vm2 = vweird.f32 %v63_v11  ;;  %v88_v23 = vand.u32 2147483647, %v63_v11 }
   0xf   :  { %187 = vpow2.f32 %v32_v12  ;;  %v76_v27 = vor.u32 1.1754944e-38, %v75_v17  ;;  %vm74_vm5 = vcmp.eq.f32.partialorder %v73_v20, 8.507059e+37 }
  0x10   :  { %189 = vpow2.f32 %v34_v13  ;;  %v91_v31 = vor.u32 1.1754944e-38, %v90_v21  ;;  %vm89_vm7 = vcmp.eq.f32.partialorder %v88_v23, 8.507059e+37  ;;  %v27_v13 = vsub.f32 %v23_v57, %v25_v61 }
  0x11   :  { %v101_v21 = vadd.f32 %v99_v1, %v95_v10 }
  0x13   :  { %v184_v14 = vpop.eup %183 }
  0x14   :  { %v186_v15 = vpop.eup %185  ;;  %v65_v16 = vmul.f32 %v184_v14, %v62_v9  ;;  %vm70_vm1 = vweird.f32 %v184_v14 }
  0x15   :  { %v80_v18 = vmul.f32 %v186_v15, %v63_v11  ;;  %vm85_vm3 = vweird.f32 %v186_v15  ;;  %v188_v25 = vpop.eup %187  ;;  %vm256_vm4 = vmor %vm69_vm0, %vm70_vm1  ;;  %v98_v11 = vmul.f32 0.75, %v96_v58 }
  0x16   :  { %v66_v19 = vsub.f32 1.0, %v65_v16  ;;  %v190_v29 = vpop.eup %189  ;;  %vm86_vm6 = vmor %vm84_vm2, %vm85_vm3  ;;  %v36_v35 = vadd.f32 1.0, %v188_v25  ;;  %v39_v45 = vmul.f32 -0.5, %v188_v25  ;;  %v42_v50 = vand.u32 2147483647, %v188_v25 }
  0x17   :  { %v81_v22 = vsub.f32 1.0, %v80_v18  ;;  %v45_v37 = vadd.f32 1.0, %v190_v29  ;;  %v48_v46 = vmul.f32 -0.5, %v190_v29  ;;  %v51_v55 = vand.u32 2147483647, %v190_v29 }
  0x18   :  { %v67_v24 = vmul.f32 %v184_v14, %v66_v19  ;;  %191 = vlog2.f32 %v36_v35  ;;  %v40_v48 = vadd.f32 1.0, %v39_v45  ;;  %vm276_vm8 = vcmp.lt.f32.partialorder %v42_v50, 0.0004427343 }
  0x19   :  { %v82_v28 = vmul.f32 %v186_v15, %v81_v22  ;;  %193 = vlog2.f32 %v45_v37  ;;  %v49_v51 = vadd.f32 1.0, %v48_v46  ;;  %vm280_vm9 = vcmp.lt.f32.partialorder %v51_v55, 0.0004427343 }
  0x1a   :  { %v68_v30 = vadd.f32 %v184_v14, %v67_v24  ;;  %v41_v63 = vmul.f32 %v188_v25, %v40_v48  ;;  %v100_v20 = vadd.f32 %v98_v11, %v94_v8 }
  0x1b   :  { %v83_v33 = vadd.f32 %v186_v15, %v82_v28  ;;  %v50_v5 = vmul.f32 %v190_v29, %v49_v51 }
  0x1c   :  { %v72_v36 = vsel %vm256_vm4, %v184_v14, %v68_v30 }
  0x1d   :  { %v77_v38 = vsel %vm74_vm5, %v76_v27, %v72_v36  ;;  %v87_v39 = vsel %vm86_vm6, %v186_v15, %v83_v33 }
  0x1e   :  { %v92_v40 = vsel %vm89_vm7, %v91_v31, %v87_v39  ;;  %v102_v41 = vsub.f32 %v20_v32, %v77_v38  ;;  %v192_v47 = vpop.eup %191 }
  0x1f   :  { %v103_v42 = vsub.f32 %v21_v34, %v92_v40  ;;  %v194_v49 = vpop.eup %193  ;;  %v38_v62 = vmul.f32 0.6931472, %v192_v47  ;;  %v225_v40 = vmov 0.0  }
  0x20   :  { %v268_v43 = vand.u32 2147483647, %v102_v41  ;;  %v47_v4 = vmul.f32 0.6931472, %v194_v49  ;;  %17 = vst.msk [vmem:[#allocation2] sm:$0x1] %vm16_vm14, %v225_v40 }
  0x21   :  { %v105_v44 = vand.u32 2147483647, %v103_v42  ;;  %v44_v14 = vsel %vm276_vm8, %v41_v63, %v38_v62 }
  0x22   :  { %195 = vrsqrt.f32 %v268_v43  ;;  %v53_v16 = vsel %vm280_vm9, %v50_v5, %v47_v4  ;;  %v54_v19 = vadd.f32 %v44_v14, %v26_v6  ;;  %vm113_vm10 = vcmp.eq.f32.partialorder %v268_v43, inf }
  0x23   :  { %197 = vrsqrt.f32 %v105_v44  ;;  %v55_v23 = vadd.f32 %v53_v16, %v27_v13  ;;  %v116_v24 = vand.u32 2147483648, %v268_v43  ;;  %vm115_vm11 = vcmp.eq.f32.partialorder %v268_v43, 0.0 }
  0x24   :  { %vm125_vm12 = vcmp.eq.f32.partialorder %v105_v44, inf  ;;  %v128_v27 = vand.u32 2147483648, %v105_v44  ;;  %vm127_vm13 = vcmp.eq.f32.partialorder %v105_v44, 0.0  ;;  %v132_v30 = vmul.f32 %v100_v20, %v54_v19 }
  0x25   :  { %v133_v33 = vmul.f32 %v101_v21, %v55_v23 }
  0x27   :  { %v136_v50 = vld [vmem:[#allocation2] sm:$0x1] }
  0x28   :  { %v196_v52 = vpop.eup %195 }
  0x29   :  { %v198_v56 = vpop.eup %197  ;;  %v107_v60 = vmul.f32 %v196_v52, %v268_v43 }
  0x2a   :  { %v119_v2 = vmul.f32 %v198_v56, %v105_v44 }
  0x2b   :  { %v108_v0 = vmul.f32 %v196_v52, %v107_v60 }
  0x2c   :  { %v120_v9 = vmul.f32 %v198_v56, %v119_v2 }
  0x2d   :  { %v109_v12 = vmul.f32 0.5, %v108_v0 }
  0x2e   :  { %v121_v15 = vmul.f32 0.5, %v120_v9 }
  0x2f   :  { %v110_v17 = vsub.f32 1.5, %v109_v12 }
  0x30   :  { %v122_v18 = vsub.f32 1.5, %v121_v15 }
  0x31   :  { %v111_v22 = vmul.f32 %v196_v52, %v110_v17 }
  0x32   :  { %v123_v25 = vmul.f32 %v198_v56, %v122_v18 }
  0x33   :  { %v112_v26 = vmul.f32 %v111_v22, %v268_v43 }
  0x34   :  { %v124_v28 = vmul.f32 %v123_v25, %v105_v44 }
  0x35   :  { %v114_v29 = vsel %vm113_vm10, %v268_v43, %v112_v26 }
  0x36   :  { %v117_v31 = vsel %vm115_vm11, %v116_v24, %v114_v29  ;;  %v126_v32 = vsel %vm125_vm12, %v105_v44, %v124_v28 }
  0x37   :  { %v129_v34 = vsel %vm127_vm13, %v128_v27, %v126_v32  ;;  %v130_v35 = vmul.f32 %v117_v31, %v268_v43 }
  0x38   :  { %v131_v36 = vmul.f32 %v129_v34, %v105_v44 }
  0x39   :  { %v134_v37 = vmul.f32 %v132_v30, %v130_v35 }
  0x3a   :  { %v135_v38 = vmul.f32 %v133_v33, %v131_v36 }
  0x3c   :  { %v137_v39 = vadd.f32 %v135_v38, %v134_v37 }
  0x3e   :  { %138 = vadd.xlane.f32.xlu0 %v137_v39 }
  0xb1   :  { %v139_v41 = vpop.xlane.xlu0 %138 }
  0xb2   :  { %v140_v42 = vrot.slane %v139_v41, 4 }
  0xb4   :  { %v141_v45 = vadd.f32 %v140_v42, %v139_v41 }
  0xb6   :  { %v142_v46 = vrot.slane %v141_v45, 2 }
  0xb8   :  { %v143_v47 = vadd.f32 %v142_v46, %v141_v45 }
  0xba   :  { %v144_v48 = vrot.slane %v143_v47, 1 }
  0xbc   :  { %v145_v49 = vadd.f32 %v144_v48, %v143_v47 }
  0xbe   :  { %175 = vpush %v145_v49 }
  0xef   :  { %s176_s1 = spop %175 }
  0xf0   :  { %v147_v43 = vstv %s176_s1 }
  0xf1   :  { %v148_v44 = vadd.f32 %v147_v43, %v136_v50 }
  0xf3   :  { %150 = vst.msk [vmem:[#allocation2] sm:$0x1] %vm16_vm14, %v148_v44 }
  0xfa   :  { %v154_v51 = vld [vmem:[#allocation2] sm:$0x1] }
  0xfb   :  { %v155_v52 = vmul.f32 0.00048828125, %v154_v51 }
  0xfd   :  { %156 = vst.msk [vmem:[#allocation2] sm:$0x1] %vm16_vm14, %v155_v52 }
  0xfe   :  { %167 = dma.vmem_to_hbm [thread:$0]  %s163_s17, 16, %s165_s20, [#allocation3]  }
  0xff   :  { %223 = dma.done.wait [#allocation3], 16  }
 0x100   :  { %224 = vsyncadd [#allocation3], 4294967280 }
 0x101   :  { %172 = vsyncpa [#allocation3], 1 }

</bundles_post_ra>
